<compile_context>
chip_gen: v6e
topology: v6e:2x2x1
jax: 0.10.0
libtpu: 0.0.40
codegen_flags: <defaults>
</compile_context>

<pallas_src>
from functools import partial

import jax
import jax.numpy as jnp
from jax.experimental import pallas as pl
from jax.experimental.pallas import tpu as pltpu


raw_text = ('We are about to study the idea of a computational process.\n'
            'Computational processes are abstract beings that inhabit computers.\n'
            'As they evolve, processes manipulate other abstract things called data.\n'
            'The evolution of a process is directed by a pattern of rules\n'
            'called a program. People create programs to direct processes. In effect,\n'
            'we conjure the spirits of the computer with our spells.').split()

vocab = sorted(set(raw_text))
VOCAB_SIZE = len(vocab)            # vocabulary size from the tutorial text (49)
CONTEXT_SIZE = 2                   # words on each side -> 2*CONTEXT_SIZE context words
EMBEDDING_DIM = 16

_LANES = 128                       # lane width (last-dim alignment)
_SUBLANES = 8                      # sublane width (second-last-dim alignment)


def _round_up(x, m):
    return ((x + m - 1) // m) * m


def cbow_kernel(idx_ref, w_ref, bias_ref, out_ref, *, n_ctx):
    # idx_ref : (Bt, 128) int32 VMEM  -- context indices, lane-padded (first n_ctx lanes real)
    # w_ref   : (Vp, Vp)  f32   VMEM  -- fused weight  emb_p @ lin_w_p.T
    # bias_ref: (1,  Vp)  f32   VMEM  -- bias, -1e30 in padded vocab columns
    # out_ref : (Bt, Vp)  f32   VMEM  -- log-probabilities (padded)
    Bt, Vp = out_ref.shape

    idx = idx_ref[...]                                             # (Bt, 128) int32
    iota_v = jax.lax.broadcasted_iota(jnp.int32, (Bt, Vp), 1)

    # counts[b, v] = multiplicity of vocab id v in context window b.
    # C-way static unroll of pure VPU compare+adds on one lane-dense tile.
    counts = jnp.zeros((Bt, Vp), jnp.float32)
    for c in range(n_ctx):                                         # static unroll (C = 4)
        counts = counts + (iota_v == idx[:, c:c + 1]).astype(jnp.float32)

    # Fused embedding-bag + linear:  counts @ (E @ W^T) + b   — one full-width
    # (Bt,128)x(128,128) MXU matmul, f32 accumulate.  Padded vocab columns of
    # the fused weight are zero and are masked out of the LSE by the -1e30 bias.
    logits = jnp.dot(counts, w_ref[...],
                     preferred_element_type=jnp.float32) + bias_ref[...]   # (Bt, Vp)

    # numerically stable log_softmax over the (padded) vocab axis
    m = jnp.max(logits, axis=-1, keepdims=True)
    shifted = logits - m
    lse = jnp.log(jnp.sum(jnp.exp(shifted), axis=-1, keepdims=True))
    out_ref[...] = shifted - lse


def prepare_cbow_params(emb_table, lin_w, lin_b):
    """One-time parameter preparation (hoisted out of the per-call path).

    Pads vocab to a lane-dense multiple of 128, fuses the embedding table and
    the (transposed) linear weight into a single (Vp, Vp) matrix, and bakes a
    -1e30 mask for padded vocab columns into the f32 bias.
    """
    V, D = emb_table.shape
    Vp = _round_up(V, _LANES)
    emb_p = jnp.zeros((Vp, D), jnp.float32).at[:V, :].set(emb_table.astype(jnp.float32))
    wt_p = jnp.zeros((D, Vp), jnp.float32).at[:, :V].set(lin_w.T.astype(jnp.float32))
    w_fused = jnp.dot(emb_p, wt_p, preferred_element_type=jnp.float32)      # (Vp, Vp)
    bias_p = jnp.full((1, Vp), -1e30, jnp.float32).at[0, :V].set(lin_b.astype(jnp.float32))
    return w_fused, bias_p


@partial(jax.jit, static_argnames=("vocab_size",))
def cbow_forward(idx, w_fused, bias_p, *, vocab_size):
    N, C = idx.shape
    Vp = w_fused.shape[0]
    Bt = _SUBLANES                              # windows per grid step (sublane tile)
    Np = _round_up(N, Bt)

    # Only the tiny per-call activation is padded inside the jit: context
    # indices to a lane-dense int32 tile (padded rows/lanes are zeros and the
    # corresponding outputs are discarded below).
    idx_p = jnp.zeros((Np, _LANES), jnp.int32).at[:N, :C].set(idx.astype(jnp.int32))

    flops = 2 * Np * Vp * Vp
    transcendentals = Np * Vp + Np                       # exp + log
    bytes_accessed = 4 * (Np * _LANES + Vp * Vp + Vp + Np * Vp)

    out_p = pl.pallas_call(
        partial(cbow_kernel, n_ctx=C),
        out_shape=jax.ShapeDtypeStruct((Np, Vp), jnp.float32),
        grid=(Np // Bt,),                                # batch of window-tiles
        in_specs=[
            pl.BlockSpec((Bt, _LANES), lambda i: (i, 0)),    # idx tile (per step)
            pl.BlockSpec((Vp, Vp), lambda i: (0, 0)),        # fused weight (resident)
            pl.BlockSpec((1, Vp), lambda i: (0, 0)),         # bias (resident)
        ],
        out_specs=pl.BlockSpec((Bt, Vp), lambda i: (i, 0)),
        compiler_params=pltpu.CompilerParams(
            dimension_semantics=("parallel",)),              # 2 TCs on v7x; no-op elsewhere
        cost_estimate=pl.CostEstimate(
            flops=flops,
            transcendentals=transcendentals,
            bytes_accessed=bytes_accessed),
    )(idx_p, w_fused, bias_p)

    # slice the padded result back to the real (N, V) log-probabilities
    return out_p[:N, :vocab_size]


if __name__ == "__main__":
    key = jax.random.PRNGKey(0)
    k_emb, k_w, k_b, k_idx = jax.random.split(key, 4)

    N = 16                                  # batch of context windows (2 grid tiles)
    C = 2 * CONTEXT_SIZE                    # 4 context words per example

    # Deterministic synthetic parameters (nn.Embedding / nn.Linear shapes).
    emb_table = jax.random.normal(k_emb, (VOCAB_SIZE, EMBEDDING_DIM), jnp.float32)
    lin_w = jax.random.normal(k_w, (VOCAB_SIZE, EMBEDDING_DIM), jnp.float32) * 0.1
    lin_b = jax.random.normal(k_b, (VOCAB_SIZE,), jnp.float32) * 0.1

    # Deterministic context-word index batch.
    idx = jax.random.randint(k_idx, (N, C), 0, VOCAB_SIZE, dtype=jnp.int32)

    # One-time parameter prep (pad + transpose + fuse), outside the call path.
    w_fused, bias_p = prepare_cbow_params(emb_table, lin_w, lin_b)
    w_fused, bias_p = jax.block_until_ready((w_fused, bias_p))

    out = cbow_forward(idx, w_fused, bias_p, vocab_size=VOCAB_SIZE)
    out = jax.block_until_ready(out)

    # Pure-JAX reference check of the same forward pass.
    ref_embedsum = emb_table[idx].sum(axis=1)
    ref_logits = ref_embedsum @ lin_w.T + lin_b
    ref = jax.nn.log_softmax(ref_logits, axis=-1)
    assert out.shape == (N, VOCAB_SIZE)
    assert jnp.allclose(out, ref, atol=1e-4, rtol=1e-4), "mismatch vs reference"

    print("KERNEL_OK")
</pallas_src>

<mosaic_0001>
module attributes {stable_mosaic.version = 11 : i64} {
  func.func @cbow_kernel(%arg0: i32, %arg1: memref<8x128xi32, #tpu.memory_space<vmem>>, %arg2: memref<128x128xf32, #tpu.memory_space<vmem>>, %arg3: memref<1x128xf32, #tpu.memory_space<vmem>>, %arg4: memref<8x128xf32, #tpu.memory_space<vmem>>) attributes {dimension_semantics = [#tpu.dimension_semantics<parallel>], iteration_bounds = array<i64: 2>, scalar_prefetch = 0 : i64, scratch_operands = 0 : i64, tpu.core_type = #tpu.core_type<tc>, window_params = [{transform_indices = @transform_0, window_bounds = array<i64: 8, 128>}, {pipeline_mode = #tpu.pipeline_mode<synchronous>, transform_indices = @transform_1, window_bounds = array<i64: 128, 128>}, {pipeline_mode = #tpu.pipeline_mode<synchronous>, transform_indices = @transform_2, window_bounds = array<i64: 1, 128>}, {transform_indices = @transform_3, window_bounds = array<i64: 8, 128>}]} {
    %c0 = arith.constant 0 : index
    %c0_0 = arith.constant 0 : index
    %0 = vector.load %arg1[%c0, %c0_0] : memref<8x128xi32, #tpu.memory_space<vmem>>, vector<8x128xi32>
    %1 = tpu.iota {dimensions = array<i32: 1>} : vector<8x128xi32>
    %cst = arith.constant 0.000000e+00 : f32
    %2 = vector.broadcast %cst : f32 to vector<8x128xf32>
    %3 = vector.extract_strided_slice %0 {offsets = [0, 0], sizes = [8, 1], strides = [1, 1]} : vector<8x128xi32> to vector<8x1xi32>
    %4 = vector.broadcast %3 : vector<8x1xi32> to vector<8x128xi32>
    %5 = arith.cmpi eq, %1, %4 : vector<8x128xi32>
    %6 = arith.extui %5 : vector<8x128xi1> to vector<8x128xi32>
    %7 = arith.sitofp %6 : vector<8x128xi32> to vector<8x128xf32>
    %8 = arith.addf %2, %7 : vector<8x128xf32>
    %9 = vector.extract_strided_slice %0 {offsets = [0, 1], sizes = [8, 1], strides = [1, 1]} : vector<8x128xi32> to vector<8x1xi32>
    %10 = vector.broadcast %9 : vector<8x1xi32> to vector<8x128xi32>
    %11 = arith.cmpi eq, %1, %10 : vector<8x128xi32>
    %12 = arith.extui %11 : vector<8x128xi1> to vector<8x128xi32>
    %13 = arith.sitofp %12 : vector<8x128xi32> to vector<8x128xf32>
    %14 = arith.addf %8, %13 : vector<8x128xf32>
    %15 = vector.extract_strided_slice %0 {offsets = [0, 2], sizes = [8, 1], strides = [1, 1]} : vector<8x128xi32> to vector<8x1xi32>
    %16 = vector.broadcast %15 : vector<8x1xi32> to vector<8x128xi32>
    %17 = arith.cmpi eq, %1, %16 : vector<8x128xi32>
    %18 = arith.extui %17 : vector<8x128xi1> to vector<8x128xi32>
    %19 = arith.sitofp %18 : vector<8x128xi32> to vector<8x128xf32>
    %20 = arith.addf %14, %19 : vector<8x128xf32>
    %21 = vector.extract_strided_slice %0 {offsets = [0, 3], sizes = [8, 1], strides = [1, 1]} : vector<8x128xi32> to vector<8x1xi32>
    %22 = vector.broadcast %21 : vector<8x1xi32> to vector<8x128xi32>
    %23 = arith.cmpi eq, %1, %22 : vector<8x128xi32>
    %24 = arith.extui %23 : vector<8x128xi1> to vector<8x128xi32>
    %25 = arith.sitofp %24 : vector<8x128xi32> to vector<8x128xf32>
    %26 = arith.addf %20, %25 : vector<8x128xf32>
    %c0_1 = arith.constant 0 : index
    %c0_2 = arith.constant 0 : index
    %27 = vector.load %arg2[%c0_1, %c0_2] : memref<128x128xf32, #tpu.memory_space<vmem>>, vector<128x128xf32>
    %cst_3 = arith.constant dense<0.000000e+00> : vector<8x128xf32>
    %28 = tpu.matmul %26, %27, %cst_3 {dimension_numbers = #tpu.dot_dimension_numbers<[1], [0], [0], [1], [0, 0, 1, 1], [], []>} : vector<8x128xf32>, vector<128x128xf32>, vector<8x128xf32> -> vector<8x128xf32>
    %c0_4 = arith.constant 0 : index
    %c0_5 = arith.constant 0 : index
    %29 = vector.load %arg3[%c0_4, %c0_5] : memref<1x128xf32, #tpu.memory_space<vmem>>, vector<1x128xf32>
    %30 = vector.broadcast %29 : vector<1x128xf32> to vector<8x128xf32>
    %31 = arith.addf %28, %30 : vector<8x128xf32>
    %cst_6 = arith.constant dense<0xFF800000> : vector<8xf32>
    %32 = vector.multi_reduction <maximumf>, %31, %cst_6 [1] : vector<8x128xf32> to vector<8xf32>
    %33 = vector.shape_cast %32 : vector<8xf32> to vector<8x1xf32>
    %34 = vector.broadcast %33 : vector<8x1xf32> to vector<8x128xf32>
    %35 = arith.subf %31, %34 : vector<8x128xf32>
    %36 = math.exp %35 : vector<8x128xf32>
    %cst_7 = arith.constant dense<0.000000e+00> : vector<8xf32>
    %37 = vector.multi_reduction <add>, %36, %cst_7 [1] : vector<8x128xf32> to vector<8xf32>
    %38 = vector.shape_cast %37 : vector<8xf32> to vector<8x1xf32>
    %39 = math.log %38 : vector<8x1xf32>
    %40 = vector.broadcast %39 : vector<8x1xf32> to vector<8x128xf32>
    %41 = arith.subf %35, %40 : vector<8x128xf32>
    %c0_8 = arith.constant 0 : index
    %c0_9 = arith.constant 0 : index
    %42 = vector.load %arg4[%c0_8, %c0_9] : memref<8x128xf32, #tpu.memory_space<vmem>>, vector<8x128xf32>
    tpu.vector_store %arg4[%c0_8, %c0_9], %41 {strides = array<i32>} : memref<8x128xf32, #tpu.memory_space<vmem>>, vector<8x128xf32>,
    return
  }
  func.func @transform_0(%arg0: i32) -> (i32, i32) {
    %c0_i32 = arith.constant 0 : i32
    %c0_i32_0 = arith.constant 0 : i32
    return %arg0, %c0_i32 : i32, i32
  }
  func.func @transform_1(%arg0: i32) -> (i32, i32) {
    %c0_i32 = arith.constant 0 : i32
    %c0_i32_0 = arith.constant 0 : i32
    %c0_i32_1 = arith.constant 0 : i32
    return %c0_i32, %c0_i32_0 : i32, i32
  }
  func.func @transform_2(%arg0: i32) -> (i32, i32) {
    %c0_i32 = arith.constant 0 : i32
    %c0_i32_0 = arith.constant 0 : i32
    %c0_i32_1 = arith.constant 0 : i32
    return %c0_i32, %c0_i32_0 : i32, i32
  }
  func.func @transform_3(%arg0: i32) -> (i32, i32) {
    %c0_i32 = arith.constant 0 : i32
    %c0_i32_0 = arith.constant 0 : i32
    return %arg0, %c0_i32 : i32, i32
  }
}

</mosaic_0001>

<bundles_post_ra>
// kernel: cbow_forward.1
= control target key start
LH: loop header
LB: loop body
LE: loop exit
PB: predicated region body
PF: predicated region fallthrough
CT: control target
= control target key end

     0   :  { %8 = vsyncpa [#allocation3], 0  ;;  %s788_s0 = inlined_call_operand.vmem [shape: s32[16,128], index: 0, kind: input, shape index: {}]   ;;  %s789_s1 = inlined_call_operand.hbm [shape: f32[128,128], index: 1, kind: input, shape index: {}]   ;;  %s790_s2 = inlined_call_operand.vmem [shape: f32[1,128], index: 2, kind: input, shape index: {}]   ;;  %s791_s3 = inlined_call_operand.hbm [shape: f32[16,128], index: 3, kind: output, shape index: {}]  }
   0x1   :  { %9 = vsyncpa [#allocation4], 0 }
   0x2   :  { %11 = vsyncpa [#allocation4 + $0x1], 0  ;;  %s659_s12 = smov 0   ;;  %s661_s13 = smov 0  }
   0x3   :  { %s663_s14 = smov 0   ;;  %s665_s15 = smov 0  }
   0x4 LB: > { %s680_s16 = sadd.s32 4294967295, %s627_s15   ;;  %s401_s17 = sadd.s32 4294967294, %s627_s15   ;;  %s627_s15 = sphi %s665_s15, %s799_s15   ;;  %s623_s14 = sphi %s663_s14, %s798_s14   ;;  %s619_s13 = sphi %s661_s13, %s797_s13   ;;  %s615_s12 = sphi %s659_s12, %s796_s12  }
   0x5   : > { %s684_s18 = sadd.s32 1, %s627_s15   ;;  %s92_s19 = sadd.s32 1, %s623_s14 }
   0x6   : > { %s89_s20 = ssub.s32 %s627_s15, %s684_s18  ;;  %p102_p0 = scmp.ne.s32.totalorder %s623_s14, %s619_s13 }
   0x7   : > { %p90_p1 = scmp.eq.s32.totalorder %s89_s20, 0  ;;  %p103_p2 = scmp.eq.s32.totalorder %s680_s16, 1 }
   0x8   : > { %p108_p3 = scmp.ne.s32.totalorder %s619_s13, %s615_s12  ;;  %p109_p4 = scmp.eq.s32.totalorder %s401_s17, 1 }
   0x9   : > { %s695_s21 = scalar_select %p90_p1, %s623_s14, %s92_s19  }
   0xa   : > { %p697_p5 = por %p103_p2, %p102_p0  ;;  %p701_p6 = por %p109_p4, %p108_p3 }
   0xb   : > { %p402_p7 = scmp.ge.s32.totalorder %s627_s15, 1  ;;  %p116_p8 = scmp.lt.s32.totalorder %s627_s15, 3 }
   0xc   : > { %s793_s23 = scalar_select %p701_p6, 1, 0 }
   0xd   : > { %p484_p9 = scmp.eq.s32.totalorder %s680_s16, 0  ;;  %p708_p10 = pnand %p402_p7, %p116_p8 }
   0xe   : > { %s629_s25 = smov [#allocation2]  }
   0xf   : > { %s128_s26 = sshll.u32 %s629_s25, 4  ;;  %p476_p11 = pneg %p708_p10  ;;  %s129_s26 = int_to_ptr.vmem [resolvable:$true] %s128_s26 }
  0x10   : > { %s548_s27 = scalar_lea.vmem %s129_s26, 2048  ;;  %p556_p3 = scmp.lt.s32.totalorder %s129_s26, %s129_s26 }
  0x11   : > { %p477_p12 = pnand %p484_p9, %p476_p11  ;;  %p549_p0 = scmp.ne.s32.totalorder %s129_s26, %s548_s27 }
  0x12   : > { %p557_p4 = scmp.lt.s32.totalorder %s548_s27, %s548_s27 }
  0x13   : > { %p539_p13 = pneg %p477_p12 }
  0x14   : > { %p558_p6 = por %p557_p4, %p556_p3 }
  0x15   : > { %p551_p1 = pnand %p549_p0, %p539_p13 }
  0x17   : > { %p552_p2 = pneg %p551_p1 }
  0x19   : > { %p559_p7 = pnand %p558_p6, %p552_p2 }
  0x1b   : > { %562 = shalt.err (!%p559_p7)
}
  0x1c   : > { %s630_s28 = smov 128   ;;  %s631_s29 = smov 8  }
  0x1d   : > { %479 = dma.hbm_to_vmem [thread:$0]  (!%p477_p12), %s789_s1, 2048, %s129_s26, [#allocation3], %s630_s28, %s630_s28, %s631_s29  }
  0x1e   : > { %154 = sbr.rel (%p708_p10) target bundleno = 700 (0x2bc), region = 32 }
  0x23   : > { %606 = dma.done.wait (%p484_p9), [#allocation3], 2048  }
  0x24   : > { %608 = vsyncadd (%p484_p9), [#allocation3], 4294965248  ;;  %p177_p8 = scmp.lt.s32.totalorder %s680_s16, 1  ;;  %v632_v0 = vmov 0   ;;  %v633_v1 = vmov 2   ;;  %v634_v2 = vmov 0.0   ;;  %v182_v22 = vlaneseq }
  0x25   : > { %528 = vset.pattern.permute.xlu0 %v632_v0  ;;  %530 = vset.pattern.permute.xlu1 %v633_v1  ;;  %v227_v4 = vld [vmem:[#allocation2 + $0x78] sm:$0xff]  ;;  %v226_v5 = vld [vmem:[#allocation2 + $0x70] sm:$0xff]  ;;  %v635_v6 = vmov 1   ;;  %v636_v7 = vmov 3   ;;  %v225_v8 = vld [vmem:[#allocation2 + $0x68] sm:$0xff]  ;;  %vm637_vm0 = vmmov 0  }
  0x26   : > { %s178_s5 = scalar_select %p177_p8, %s680_s16, 1  ;;  %435 = vmatprep.subr.mxu0 %v634_v2  ;;  %v224_v9 = vld [vmem:[#allocation2 + $0x60] sm:$0xff]  ;;  %v223_v10 = vld [vmem:[#allocation2 + $0x58] sm:$0xff]  ;;  %467 = vmatprep.mubr.msk.f32.mxu0 %vm637_vm0, %v634_v2  ;;  %v222_v11 = vld [vmem:[#allocation2 + $0x50] sm:$0xff]  ;;  %v183_v23 = vand.u32 127, %v182_v22 }
  0x27   : > { %436 = vmatpush3.msra.mxu0 %v227_v4  ;;  %v221_v12 = vld [vmem:[#allocation2 + $0x48] sm:$0xff]  ;;  %v220_v13 = vld [vmem:[#allocation2 + $0x40] sm:$0xff]  ;;  %v219_v14 = vld [vmem:[#allocation2 + $0x38] sm:$0xff]  ;;  %s174_s17 = sand.u32 1, %s619_s13   ;;  %s415_s20 = sshll.u32 %s680_s16, 7 }
  0x28   : > { %s408_s6 = sshll.u32 %s178_s5, 3  ;;  %437 = vmatprep.subr.mxu0 %v634_v2  ;;  %v218_v15 = vld [vmem:[#allocation2 + $0x30] sm:$0xff]  ;;  %v217_v16 = vld [vmem:[#allocation2 + $0x28] sm:$0xff]  ;;  %v216_v17 = vld [vmem:[#allocation2 + $0x20] sm:$0xff]  ;;  %s407_s19 = sshll.u32 %s174_s17, 3 }
  0x29   : > { %s180_s9 = scalar_lea.vmem %s788_s0, %s408_s6  ;;  %438 = vmatpush3.msra.mxu0 %v226_v5  ;;  %v215_v18 = vld [vmem:[#allocation2 + $0x18] sm:$0xff]  ;;  %v214_v19 = vld [vmem:[#allocation2 + $0x10] sm:$0xff]  ;;  %v213_v20 = vld [vmem:[#allocation2 + $0x8] sm:$0xff]  ;;  %s176_s24 = scalar_lea.vmem [#allocation5], %s407_s19 }
  0x2a   : > { %v181_v3 = vld [vmem:[%s180_s9] sm:$0xff]  ;;  %439 = vmatprep.subr.mxu0 %v634_v2  ;;  %s330_s25 = sshll.u32 %s176_s24, 4  ;;  %s328_s28 = scalar_lea.hbm %s791_s3, %s415_s20  ;;  %s331_s25 = int_to_ptr.vmem [resolvable:$true] %s330_s25 }
  0x2b   : > { %185 = vperm.xlu0 %528, %v181_v3   ;;  %199 = vperm.xlu1 %530, %v181_v3   ;;  %v212_v21 = vld [vmem:[#allocation2] sm:$0xff]  ;;  %s317_s29 = scalar_lea.sflag [#allocation4], %s174_s17  ;;  %s563_s30 = scalar_lea.vmem %s331_s25, 128 }
  0x2c   : > { %440 = vmatpush3.msra.mxu0 %v225_v8  ;;  %v413_v35 = vld [vmem:[%s790_s2] ss:$0 sm:$0xff]  ;;  %p564_p6 = scmp.ne.s32.totalorder %s331_s25, %s563_s30  ;;  %s638_s4 = smov [#allocation5]  }
  0x2d   : > { %441 = vmatprep.subr.mxu0 %v634_v2  ;;  %s567_s5 = sshll.u32 %s638_s4, 4  ;;  %s568_s5 = int_to_ptr.vmem [resolvable:$false] %s567_s5 }
  0x2e   : > { %442 = vmatpush3.msra.mxu0 %v224_v9  ;;  %p565_p9 = pnand %p564_p6, %p697_p5  ;;  %s569_s16 = scalar_lea.vmem %s568_s5, 256 }
  0x2f   : > { %529 = vset.pattern.permute.xlu0 %v635_v6  ;;  %531 = vset.pattern.permute.xlu1 %v636_v7  ;;  %p570_p11 = scmp.lt.s32.totalorder %s331_s25, %s568_s5  ;;  %p571_p12 = scmp.lt.s32.totalorder %s569_s16, %s563_s30 }
  0x30   : > { %192 = vperm.xlu0 %529, %v181_v3   ;;  %206 = vperm.xlu1 %531, %v181_v3   ;;  %p566_p10 = pneg %p565_p9 }
  0x31   : > { %443 = vmatprep.subr.mxu0 %v634_v2  ;;  %p572_p13 = por %p571_p12, %p570_p11 }
  0x32   : > { %444 = vmatpush3.msra.mxu0 %v223_v10 }
  0x33   : > { %445 = vmatprep.subr.mxu0 %v634_v2  ;;  %p573_p0 = pnand %p572_p13, %p566_p10 }
  0x34   : > { %532 = vset.pattern.permute.xlu0 %v636_v7  ;;  %446 = vmatpush3.msra.mxu0 %v222_v11 }
  0x35   : > { %447 = vmatprep.subr.mxu0 %v634_v2 }
  0x36   : > { %448 = vmatpush3.msra.mxu0 %v221_v12 }
  0x37   : > { %449 = vmatprep.subr.mxu0 %v634_v2 }
  0x38   : > { %450 = vmatpush3.msra.mxu0 %v220_v13 }
  0x39   : > { %451 = vmatprep.subr.mxu0 %v634_v2 }
  0x3a   : > { %452 = vmatpush3.msra.mxu0 %v219_v14 }
  0x3b   : > { %453 = vmatprep.subr.mxu0 %v634_v2 }
  0x3c   : > { %454 = vmatpush3.msra.mxu0 %v218_v15 }
  0x3d   : > { %455 = vmatprep.subr.mxu0 %v634_v2 }
  0x3e   : > { %456 = vmatpush3.msra.mxu0 %v217_v16 }
  0x3f   : > { %457 = vmatprep.subr.mxu0 %v634_v2 }
  0x40   : > { %458 = vmatpush3.msra.mxu0 %v216_v17 }
  0x41   : > { %459 = vmatprep.subr.mxu0 %v634_v2 }
  0x42   : > { %460 = vmatpush3.msra.mxu0 %v215_v18 }
  0x43   : > { %461 = vmatprep.subr.mxu0 %v634_v2 }
  0x44   : > { %462 = vmatpush3.msra.mxu0 %v214_v19 }
  0x45   : > { %463 = vmatprep.subr.mxu0 %v634_v2 }
  0x46   : > { %464 = vmatpush3.msra.mxu0 %v213_v20 }
  0x47   : > { %465 = vmatprep.subr.mxu0 %v634_v2 }
  0x48   : > { %466 = vmatpush3.msra.mxu0 %v212_v21 }
  0xa6   : > { %v186_v24 = vpop.permute.xlu0 %185  ;;  %v200_v25 = vpop.permute.xlu1 %199 }
  0xa7   : > { %vm187_vm1 = vcmp.eq.s32.totalorder %v183_v23, %v186_v24  ;;  %vm201_vm2 = vcmp.eq.s32.totalorder %v183_v23, %v200_v25 }
  0xa8   : > { %v409_v28 = vsel %vm187_vm1, 1.0, %v634_v2  ;;  %v411_v31 = vsel %vm201_vm2, 1.0, %v634_v2 }
  0xab   : > { %v193_v26 = vpop.permute.xlu0 %192  ;;  %v207_v27 = vpop.permute.xlu1 %206 }
  0xac   : > { %vm194_vm3 = vcmp.eq.s32.totalorder %v183_v23, %v193_v26  ;;  %vm208_vm4 = vcmp.eq.s32.totalorder %v183_v23, %v207_v27 }
  0xad   : > { %v410_v29 = vsel %vm194_vm3, 1.0, %v634_v2  ;;  %v412_v32 = vsel %vm208_vm4, 1.0, %v634_v2 }
  0xae   : > { %v197_v30 = vadd.f32 %v410_v29, %v409_v28 }
  0xb0   : > { %v204_v33 = vadd.f32 %v411_v31, %v197_v30 }
  0xb2   : > { %v211_v34 = vadd.f32 %v412_v32, %v204_v33 }
  0xb4   : > { %468 = vmatmul.mubr.f32.vlgmr.msra.gmra.mxu0 %v211_v34 }
 0x174   : > { %v301_v36 = vpop.f32.mrf.mxu0 }
 0x175   : > { %v302_v37 = vadd.f32 %v413_v35, %v301_v36 }
 0x176   : > { %v469_v38 = vpop.f32.mrf.mxu0 }
 0x177   : > { %305 = vmax.xlane.f32.xlu1 %v302_v37 }
 0x200   : > { %v306_v39 = vpop.xlane.xlu1 %305 }
 0x201   : > { %v307_v40 = vsub.f32 %v302_v37, %v306_v39 }
 0x203   : > { %v308_v41 = vmul.f32 1.442695, %v307_v40 }
 0x205   : > { %533 = vpow2.f32 %v308_v41 }
 0x212   : > { %v534_v42 = vpop.eup %533 }
 0x213   : > { %310 = vadd.xlane.f32.xlu0 %v534_v42 }
 0x29c   : > { %v311_v43 = vpop.xlane.xlu0 %310 }
 0x29d   : > { %535 = vlog2.f32 %v311_v43 }
 0x2aa   : > { %v536_v44 = vpop.eup %535 }
 0x2ab   : > { %v313_v45 = vmul.f32 0.6931472, %v536_v44 }
 0x2ad   : > { %v314_v46 = vsub.f32 %v307_v40, %v313_v45 }
 0x2af   : > { %315 = vst [vmem:[%s176_s24] sm:$0xff] %v314_v46 }
 0x2b0   : > { %576 = shalt.err (!%p573_p0)
}
 0x2b1   : > { %s577_s6 = scalar_lea.hbm %s328_s28, 128  ;;  %s581_s9 = scalar_lea.hbm %s791_s3, 256 }
 0x2b2   : > { %p578_p1 = scmp.ne.s32.totalorder %s328_s28, %s577_s6  ;;  %p582_p4 = scmp.lt.s32.totalorder %s328_s28, %s791_s3 }
 0x2b3   : > { %p583_p7 = scmp.lt.s32.totalorder %s581_s9, %s577_s6 }
 0x2b4   : > { %p579_p2 = pnand %p578_p1, %p697_p5 }
 0x2b5   : > { %p584_p8 = por %p583_p7, %p582_p4 }
 0x2b6   : > { %p580_p3 = pneg %p579_p2 }
 0x2b8   : > { %p585_p6 = pnand %p584_p8, %p580_p3 }
 0x2ba   : > { %588 = shalt.err (!%p585_p6)
}
 0x2bb   : > { %474 = dma.vmem_to_hbm [thread:$0]  (%p697_p5), %s331_s25, 128, %s328_s28, %s317_s29  }
 0x2bc PF: > { %p486_p9 = scmp.ge.s32.totalorder %s627_s15, 2  ;;  %s342_s17 = sand.u32 1, %s615_s12  }
 0x2bd   : > { %p795_p10 = scmp.ne.s32.totalorder %s793_s23, 0  ;;  %s343_s19 = scalar_lea.sflag [#allocation4], %s342_s17 }
 0x2bf   : > { %p481_p11 = pnand %p486_p9, %p795_p10 }
 0x2c1   : > { %p482_p12 = pneg %p481_p11 }
 0x2c3   : > { %610 = dma.done.wait (%p482_p12), %s343_s19, 128  }
 0x2c4   : > { %612 = vsyncadd (%p482_p12), %s343_s19, 4294967168  ;;  %p14_p13 = scmp.ge.s32.totalorder %s684_s18, 4   ;;  %s796_s12 = smov %s619_s13 }
 0x2c5   : > { %s797_s13 = smov %s623_s14  ;;  %s798_s14 = smov %s695_s21 }
 0x2c6   : > { %s799_s15 = smov %s684_s18  ;;  %16 = sbr.rel (!%p14_p13) target bundleno = 4 (0x4), region = 72 }
 0x2cb   :  { %348 = vsyncpa [#allocation3], 1 }
 0x2cc   :  { %350 = vsyncpa [#allocation3 + $0x1], 1 }
 0x2cd   :  { %351 = vsyncpa [#allocation4], 1 }
 0x2ce   :  { %353 = vsyncpa [#allocation4 + $0x1], 1 }

</bundles_post_ra>
